<compile_context>
chip_gen: v6e
topology: v6e:2x2x1
jax: 0.10.0
libtpu: 0.0.40
codegen_flags: <defaults>
</compile_context>

<pallas_src>
import functools

import jax
import jax.numpy as jnp
import numpy as np
from jax.experimental import pallas as pl
from jax.experimental.pallas import tpu as pltpu  # noqa: F401  (TPU backend)

EPS = 1e-5
LANES = 128          # pad all feature dims to one full lane tile
SUBLANES = 8         # batch padded to a multiple of the sublane tile
NUM_LAYERS = 4       # fc1, fc2, fc3, last
PARAM_ROWS = 16      # 4 biases + 3 gammas + 3 betas, padded to sublane tiles
ROW_BIAS = 0         # rows 0..3  : b1, b2, b3, b_last
ROW_GAMMA = 4        # rows 4..6  : g1, g2, g3
ROW_BETA = 7         # rows 7..9  : be1, be2, be3


def dnn_kernel(x_ref, w_ref, p_ref, out_ref, *, n_valid):
    """Whole forward pass on one VMEM-resident block.

    n_valid: static number of real (un-padded) batch rows; used for exact
    BatchNorm statistics when the batch was padded to a sublane multiple.
    """
    b_pad = x_ref.shape[0]
    inv_n = 1.0 / float(n_valid)

    if n_valid == b_pad:
        row_mask = None                              # fully tile-aligned batch
    else:
        row_ids = jax.lax.broadcasted_iota(jnp.int32, (b_pad, 1), 0)
        row_mask = (row_ids < n_valid).astype(jnp.float32)

    def prow(i):
        # Static (1, 128) row of the packed bias/BN slab.
        return p_ref[pl.ds(i, 1), :]

    def linear(h, li):
        # (Bp,128) @ (128,128) on the MXU; padded rows/cols are zero-weighted.
        return jnp.dot(h, w_ref[li], preferred_element_type=jnp.float32) + prow(ROW_BIAS + li)

    def bn_relu(h, li):
        # BatchNorm1d in training mode (batch mean, biased variance), fused
        # into one scale/shift. Padded lanes have gamma=beta=0 -> stay zero.
        if row_mask is not None:
            h = h * row_mask                         # zero padded batch rows
        mean = jnp.sum(h, axis=0, keepdims=True) * inv_n
        d = h - mean
        if row_mask is not None:
            d = d * row_mask
        var = jnp.sum(d * d, axis=0, keepdims=True) * inv_n
        scale = prow(ROW_GAMMA + li) * jax.lax.rsqrt(var + EPS)   # EUP slot
        shift = prow(ROW_BETA + li) - mean * scale
        return jnp.maximum(h * scale + shift, 0.0)

    h = x_ref[...]
    h = bn_relu(linear(h, 0), 0)
    h = bn_relu(linear(h, 1), 1)
    h = bn_relu(linear(h, 2), 2)
    out_ref[...] = linear(h, 3)                      # lane-dense (Bp, 128) store


def _pack_params(params, input_size, num_classes):
    """Pack all weights/biases/BN params into two 128-lane-padded slabs."""
    assert input_size <= LANES, "first-layer input must fit one 128-lane tile"
    # TODO(synk): tile the first matmul over K if input_size ever exceeds 128.
    dims = [(input_size, 8), (8, 4), (4, 2), (2, num_classes)]
    names = ["1", "2", "3", "l"]

    w_slab = jnp.zeros((NUM_LAYERS, LANES, LANES), jnp.float32)
    p_slab = jnp.zeros((PARAM_ROWS, LANES), jnp.float32)
    for li, ((fi, fo), n) in enumerate(zip(dims, names)):
        w_slab = w_slab.at[li, :fi, :fo].set(params[f"w{n}"])
        p_slab = p_slab.at[ROW_BIAS + li, :fo].set(params[f"b{n}"].reshape(-1))
    for li, ((_, fo), n) in enumerate(zip(dims[:3], names[:3])):
        p_slab = p_slab.at[ROW_GAMMA + li, :fo].set(params[f"g{n}"].reshape(-1))
        p_slab = p_slab.at[ROW_BETA + li, :fo].set(params[f"be{n}"].reshape(-1))
    return w_slab, p_slab


def _dnn_forward(x, params):
    """x: (B, input_size) f32. params: dict of weights/biases/bn params."""
    B, input_size = x.shape
    num_classes = params["wl"].shape[1]
    Bp = max(SUBLANES, ((B + SUBLANES - 1) // SUBLANES) * SUBLANES)

    w_slab, p_slab = _pack_params(params, input_size, num_classes)
    x_pad = jnp.zeros((Bp, LANES), jnp.float32).at[:B, :input_size].set(x)

    out_pad = pl.pallas_call(
        functools.partial(dnn_kernel, n_valid=B),
        out_shape=jax.ShapeDtypeStruct((Bp, LANES), jnp.float32),
        in_specs=[
            pl.BlockSpec((Bp, LANES), lambda: (0, 0)),
            pl.BlockSpec((NUM_LAYERS, LANES, LANES), lambda: (0, 0, 0)),
            pl.BlockSpec((PARAM_ROWS, LANES), lambda: (0, 0)),
        ],
        out_specs=pl.BlockSpec((Bp, LANES), lambda: (0, 0)),
    )(x_pad, w_slab, p_slab)

    return out_pad[:B, :num_classes]


dnn_forward = jax.jit(_dnn_forward)


def init_params(key, input_size, num_classes=1):
    """Deterministic synthetic init (shapes match the PyTorch module)."""
    dims = [(input_size, 8), (8, 4), (4, 2), (2, num_classes)]
    names = ["1", "2", "3", "l"]
    params = {}
    for (fan_in, fan_out), n in zip(dims, names):
        key, kw, kb = jax.random.split(key, 3)
        bound = 1.0 / np.sqrt(fan_in)
        # stored as (in, out) == PyTorch weight (out, in) transposed
        params[f"w{n}"] = jax.random.uniform(
            kw, (fan_in, fan_out), jnp.float32, -bound, bound)
        params[f"b{n}"] = jax.random.uniform(
            kb, (1, fan_out), jnp.float32, -bound, bound)
    for (_, fan_out), n in zip(dims[:3], names[:3]):
        key, kg, kbeta = jax.random.split(key, 3)
        params[f"g{n}"] = 1.0 + 0.1 * jax.random.normal(kg, (1, fan_out), jnp.float32)
        params[f"be{n}"] = 0.1 * jax.random.normal(kbeta, (1, fan_out), jnp.float32)
    return params


def dnn_reference(x, p):
    """Pure-JAX reference (unpadded, unpacked) for correctness check."""
    def bn_relu(h, g, be):
        mean = jnp.mean(h, axis=0, keepdims=True)
        d = h - mean
        var = jnp.mean(d * d, axis=0, keepdims=True)
        scale = g * jax.lax.rsqrt(var + EPS)
        return jnp.maximum(h * scale + (be - mean * scale), 0.0)

    h = bn_relu(x @ p["w1"] + p["b1"], p["g1"], p["be1"])
    h = bn_relu(h @ p["w2"] + p["b2"], p["g2"], p["be2"])
    h = bn_relu(h @ p["w3"] + p["b3"], p["g3"], p["be3"])
    return h @ p["wl"] + p["bl"]


if __name__ == "__main__":
    key = jax.random.PRNGKey(0)
    k_in, k_in2, k_p = jax.random.split(key, 3)

    input_size = 16
    params = init_params(k_p, input_size, num_classes=1)

    # Case 1: tile-aligned batch (mask path compiled away).
    x = jax.random.normal(k_in, (64, input_size), jnp.float32)
    out = jax.block_until_ready(dnn_forward(x, params))
    ref = dnn_reference(x, params)
    np.testing.assert_allclose(np.asarray(out), np.asarray(ref),
                               rtol=1e-4, atol=1e-4)

    # Case 2: ragged batch (exercises the masked-BatchNorm path).
    x2 = jax.random.normal(k_in2, (30, input_size), jnp.float32)
    out2 = jax.block_until_ready(dnn_forward(x2, params))
    ref2 = dnn_reference(x2, params)
    np.testing.assert_allclose(np.asarray(out2), np.asarray(ref2),
                               rtol=1e-4, atol=1e-4)

    print("KERNEL_OK")
</pallas_src>

<mosaic_0001>
module attributes {stable_mosaic.version = 11 : i64} {
  func.func @dnn_kernel(%arg0: memref<64x128xf32, #tpu.memory_space<vmem>>, %arg1: memref<4x128x128xf32, #tpu.memory_space<vmem>>, %arg2: memref<16x128xf32, #tpu.memory_space<vmem>>, %arg3: memref<64x128xf32, #tpu.memory_space<vmem>>) attributes {dimension_semantics = [], scalar_prefetch = 0 : i64, scratch_operands = 0 : i64, tpu.core_type = #tpu.core_type<tc>} {
    %c0 = arith.constant 0 : index
    %c0_0 = arith.constant 0 : index
    %0 = vector.load %arg0[%c0, %c0_0] : memref<64x128xf32, #tpu.memory_space<vmem>>, vector<64x128xf32>
    %c0_1 = arith.constant 0 : index
    %c0_2 = arith.constant 0 : index
    %c0_3 = arith.constant 0 : index
    %1 = vector.load %arg1[%c0_1, %c0_2, %c0_3] : memref<4x128x128xf32, #tpu.memory_space<vmem>>, vector<1x128x128xf32>
    %2 = vector.shape_cast %1 : vector<1x128x128xf32> to vector<128x128xf32>
    %cst = arith.constant dense<0.000000e+00> : vector<64x128xf32>
    %3 = tpu.matmul %0, %2, %cst {dimension_numbers = #tpu.dot_dimension_numbers<[1], [0], [0], [1], [0, 0, 1, 1], [], []>} : vector<64x128xf32>, vector<128x128xf32>, vector<64x128xf32> -> vector<64x128xf32>
    %c0_4 = arith.constant 0 : index
    %c0_5 = arith.constant 0 : index
    %4 = vector.load %arg2[%c0_4, %c0_5] : memref<16x128xf32, #tpu.memory_space<vmem>>, vector<1x128xf32>
    %5 = vector.broadcast %4 : vector<1x128xf32> to vector<64x128xf32>
    %6 = arith.addf %3, %5 : vector<64x128xf32>
    %cst_6 = arith.constant dense<0.000000e+00> : vector<128xf32>
    %7 = vector.multi_reduction <add>, %6, %cst_6 [0] : vector<64x128xf32> to vector<128xf32>
    %8 = vector.shape_cast %7 : vector<128xf32> to vector<1x128xf32>
    %cst_7 = arith.constant 1.562500e-02 : f32
    %9 = vector.broadcast %cst_7 : f32 to vector<1x128xf32>
    %10 = arith.mulf %8, %9 : vector<1x128xf32>
    %11 = vector.broadcast %10 : vector<1x128xf32> to vector<64x128xf32>
    %12 = arith.subf %6, %11 : vector<64x128xf32>
    %13 = arith.mulf %12, %12 : vector<64x128xf32>
    %cst_8 = arith.constant dense<0.000000e+00> : vector<128xf32>
    %14 = vector.multi_reduction <add>, %13, %cst_8 [0] : vector<64x128xf32> to vector<128xf32>
    %15 = vector.shape_cast %14 : vector<128xf32> to vector<1x128xf32>
    %cst_9 = arith.constant 1.562500e-02 : f32
    %16 = vector.broadcast %cst_9 : f32 to vector<1x128xf32>
    %17 = arith.mulf %15, %16 : vector<1x128xf32>
    %c4 = arith.constant 4 : index
    %c0_10 = arith.constant 0 : index
    %18 = vector.load %arg2[%c4, %c0_10] : memref<16x128xf32, #tpu.memory_space<vmem>>, vector<1x128xf32>
    %cst_11 = arith.constant 9.99999974E-6 : f32
    %19 = vector.broadcast %cst_11 : f32 to vector<1x128xf32>
    %20 = arith.addf %17, %19 : vector<1x128xf32>
    %21 = math.rsqrt %20 : vector<1x128xf32>
    %22 = arith.mulf %18, %21 : vector<1x128xf32>
    %c7 = arith.constant 7 : index
    %c0_12 = arith.constant 0 : index
    %23 = vector.load %arg2[%c7, %c0_12] : memref<16x128xf32, #tpu.memory_space<vmem>>, vector<1x128xf32>
    %24 = arith.mulf %10, %22 : vector<1x128xf32>
    %25 = arith.subf %23, %24 : vector<1x128xf32>
    %26 = vector.broadcast %22 : vector<1x128xf32> to vector<64x128xf32>
    %27 = arith.mulf %6, %26 : vector<64x128xf32>
    %28 = vector.broadcast %25 : vector<1x128xf32> to vector<64x128xf32>
    %29 = arith.addf %27, %28 : vector<64x128xf32>
    %cst_13 = arith.constant 0.000000e+00 : f32
    %30 = vector.broadcast %cst_13 : f32 to vector<64x128xf32>
    %31 = arith.maximumf %29, %30 : vector<64x128xf32>
    %c1 = arith.constant 1 : index
    %c0_14 = arith.constant 0 : index
    %c0_15 = arith.constant 0 : index
    %32 = vector.load %arg1[%c1, %c0_14, %c0_15] : memref<4x128x128xf32, #tpu.memory_space<vmem>>, vector<1x128x128xf32>
    %33 = vector.shape_cast %32 : vector<1x128x128xf32> to vector<128x128xf32>
    %cst_16 = arith.constant dense<0.000000e+00> : vector<64x128xf32>
    %34 = tpu.matmul %31, %33, %cst_16 {dimension_numbers = #tpu.dot_dimension_numbers<[1], [0], [0], [1], [0, 0, 1, 1], [], []>} : vector<64x128xf32>, vector<128x128xf32>, vector<64x128xf32> -> vector<64x128xf32>
    %c1_17 = arith.constant 1 : index
    %c0_18 = arith.constant 0 : index
    %35 = vector.load %arg2[%c1_17, %c0_18] : memref<16x128xf32, #tpu.memory_space<vmem>>, vector<1x128xf32>
    %36 = vector.broadcast %35 : vector<1x128xf32> to vector<64x128xf32>
    %37 = arith.addf %34, %36 : vector<64x128xf32>
    %cst_19 = arith.constant dense<0.000000e+00> : vector<128xf32>
    %38 = vector.multi_reduction <add>, %37, %cst_19 [0] : vector<64x128xf32> to vector<128xf32>
    %39 = vector.shape_cast %38 : vector<128xf32> to vector<1x128xf32>
    %cst_20 = arith.constant 1.562500e-02 : f32
    %40 = vector.broadcast %cst_20 : f32 to vector<1x128xf32>
    %41 = arith.mulf %39, %40 : vector<1x128xf32>
    %42 = vector.broadcast %41 : vector<1x128xf32> to vector<64x128xf32>
    %43 = arith.subf %37, %42 : vector<64x128xf32>
    %44 = arith.mulf %43, %43 : vector<64x128xf32>
    %cst_21 = arith.constant dense<0.000000e+00> : vector<128xf32>
    %45 = vector.multi_reduction <add>, %44, %cst_21 [0] : vector<64x128xf32> to vector<128xf32>
    %46 = vector.shape_cast %45 : vector<128xf32> to vector<1x128xf32>
    %cst_22 = arith.constant 1.562500e-02 : f32
    %47 = vector.broadcast %cst_22 : f32 to vector<1x128xf32>
    %48 = arith.mulf %46, %47 : vector<1x128xf32>
    %c5 = arith.constant 5 : index
    %c0_23 = arith.constant 0 : index
    %49 = vector.load %arg2[%c5, %c0_23] : memref<16x128xf32, #tpu.memory_space<vmem>>, vector<1x128xf32>
    %cst_24 = arith.constant 9.99999974E-6 : f32
    %50 = vector.broadcast %cst_24 : f32 to vector<1x128xf32>
    %51 = arith.addf %48, %50 : vector<1x128xf32>
    %52 = math.rsqrt %51 : vector<1x128xf32>
    %53 = arith.mulf %49, %52 : vector<1x128xf32>
    %c8 = arith.constant 8 : index
    %c0_25 = arith.constant 0 : index
    %54 = vector.load %arg2[%c8, %c0_25] : memref<16x128xf32, #tpu.memory_space<vmem>>, vector<1x128xf32>
    %55 = arith.mulf %41, %53 : vector<1x128xf32>
    %56 = arith.subf %54, %55 : vector<1x128xf32>
    %57 = vector.broadcast %53 : vector<1x128xf32> to vector<64x128xf32>
    %58 = arith.mulf %37, %57 : vector<64x128xf32>
    %59 = vector.broadcast %56 : vector<1x128xf32> to vector<64x128xf32>
    %60 = arith.addf %58, %59 : vector<64x128xf32>
    %cst_26 = arith.constant 0.000000e+00 : f32
    %61 = vector.broadcast %cst_26 : f32 to vector<64x128xf32>
    %62 = arith.maximumf %60, %61 : vector<64x128xf32>
    %c2 = arith.constant 2 : index
    %c0_27 = arith.constant 0 : index
    %c0_28 = arith.constant 0 : index
    %63 = vector.load %arg1[%c2, %c0_27, %c0_28] : memref<4x128x128xf32, #tpu.memory_space<vmem>>, vector<1x128x128xf32>
    %64 = vector.shape_cast %63 : vector<1x128x128xf32> to vector<128x128xf32>
    %cst_29 = arith.constant dense<0.000000e+00> : vector<64x128xf32>
    %65 = tpu.matmul %62, %64, %cst_29 {dimension_numbers = #tpu.dot_dimension_numbers<[1], [0], [0], [1], [0, 0, 1, 1], [], []>} : vector<64x128xf32>, vector<128x128xf32>, vector<64x128xf32> -> vector<64x128xf32>
    %c2_30 = arith.constant 2 : index
    %c0_31 = arith.constant 0 : index
    %66 = vector.load %arg2[%c2_30, %c0_31] : memref<16x128xf32, #tpu.memory_space<vmem>>, vector<1x128xf32>
    %67 = vector.broadcast %66 : vector<1x128xf32> to vector<64x128xf32>
    %68 = arith.addf %65, %67 : vector<64x128xf32>
    %cst_32 = arith.constant dense<0.000000e+00> : vector<128xf32>
    %69 = vector.multi_reduction <add>, %68, %cst_32 [0] : vector<64x128xf32> to vector<128xf32>
    %70 = vector.shape_cast %69 : vector<128xf32> to vector<1x128xf32>
    %cst_33 = arith.constant 1.562500e-02 : f32
    %71 = vector.broadcast %cst_33 : f32 to vector<1x128xf32>
    %72 = arith.mulf %70, %71 : vector<1x128xf32>
    %73 = vector.broadcast %72 : vector<1x128xf32> to vector<64x128xf32>
    %74 = arith.subf %68, %73 : vector<64x128xf32>
    %75 = arith.mulf %74, %74 : vector<64x128xf32>
    %cst_34 = arith.constant dense<0.000000e+00> : vector<128xf32>
    %76 = vector.multi_reduction <add>, %75, %cst_34 [0] : vector<64x128xf32> to vector<128xf32>
    %77 = vector.shape_cast %76 : vector<128xf32> to vector<1x128xf32>
    %cst_35 = arith.constant 1.562500e-02 : f32
    %78 = vector.broadcast %cst_35 : f32 to vector<1x128xf32>
    %79 = arith.mulf %77, %78 : vector<1x128xf32>
    %c6 = arith.constant 6 : index
    %c0_36 = arith.constant 0 : index
    %80 = vector.load %arg2[%c6, %c0_36] : memref<16x128xf32, #tpu.memory_space<vmem>>, vector<1x128xf32>
    %cst_37 = arith.constant 9.99999974E-6 : f32
    %81 = vector.broadcast %cst_37 : f32 to vector<1x128xf32>
    %82 = arith.addf %79, %81 : vector<1x128xf32>
    %83 = math.rsqrt %82 : vector<1x128xf32>
    %84 = arith.mulf %80, %83 : vector<1x128xf32>
    %c9 = arith.constant 9 : index
    %c0_38 = arith.constant 0 : index
    %85 = vector.load %arg2[%c9, %c0_38] : memref<16x128xf32, #tpu.memory_space<vmem>>, vector<1x128xf32>
    %86 = arith.mulf %72, %84 : vector<1x128xf32>
    %87 = arith.subf %85, %86 : vector<1x128xf32>
    %88 = vector.broadcast %84 : vector<1x128xf32> to vector<64x128xf32>
    %89 = arith.mulf %68, %88 : vector<64x128xf32>
    %90 = vector.broadcast %87 : vector<1x128xf32> to vector<64x128xf32>
    %91 = arith.addf %89, %90 : vector<64x128xf32>
    %cst_39 = arith.constant 0.000000e+00 : f32
    %92 = vector.broadcast %cst_39 : f32 to vector<64x128xf32>
    %93 = arith.maximumf %91, %92 : vector<64x128xf32>
    %c3 = arith.constant 3 : index
    %c0_40 = arith.constant 0 : index
    %c0_41 = arith.constant 0 : index
    %94 = vector.load %arg1[%c3, %c0_40, %c0_41] : memref<4x128x128xf32, #tpu.memory_space<vmem>>, vector<1x128x128xf32>
    %95 = vector.shape_cast %94 : vector<1x128x128xf32> to vector<128x128xf32>
    %cst_42 = arith.constant dense<0.000000e+00> : vector<64x128xf32>
    %96 = tpu.matmul %93, %95, %cst_42 {dimension_numbers = #tpu.dot_dimension_numbers<[1], [0], [0], [1], [0, 0, 1, 1], [], []>} : vector<64x128xf32>, vector<128x128xf32>, vector<64x128xf32> -> vector<64x128xf32>
    %c3_43 = arith.constant 3 : index
    %c0_44 = arith.constant 0 : index
    %97 = vector.load %arg2[%c3_43, %c0_44] : memref<16x128xf32, #tpu.memory_space<vmem>>, vector<1x128xf32>
    %98 = vector.broadcast %97 : vector<1x128xf32> to vector<64x128xf32>
    %99 = arith.addf %96, %98 : vector<64x128xf32>
    %c0_45 = arith.constant 0 : index
    %c0_46 = arith.constant 0 : index
    %100 = vector.load %arg3[%c0_45, %c0_46] : memref<64x128xf32, #tpu.memory_space<vmem>>, vector<64x128xf32>
    tpu.vector_store %arg3[%c0_45, %c0_46], %99 {strides = array<i32>} : memref<64x128xf32, #tpu.memory_space<vmem>>, vector<64x128xf32>,
    return
  }
}

</mosaic_0001>

<bundles_post_ra>
// kernel: _dnn_forward.1
= control target key start
LH: loop header
LB: loop body
LE: loop exit
PB: predicated region body
PF: predicated region fallthrough
CT: control target
= control target key end

     0   :  { %s1538_s1 = inlined_call_operand.vmem [shape: f32[4,128,128], index: 1, kind: input, shape index: {}]   ;;  %s1539_s0 = inlined_call_operand.vmem [shape: f32[64,128], index: 0, kind: input, shape index: {}]   ;;  %s1540_s2 = inlined_call_operand.vmem [shape: f32[16,128], index: 2, kind: input, shape index: {}]   ;;  %s1541_s3 = inlined_call_operand.vmem [shape: f32[64,128], index: 3, kind: output, shape index: {}]  }
   0x1   :  { %v37_v0 = vld [vmem:[%s1538_s1 + $0x78] sm:$0xff]  ;;  %v36_v1 = vld [vmem:[%s1538_s1 + $0x70] sm:$0xff]  ;;  %v35_v2 = vld [vmem:[%s1538_s1 + $0x68] sm:$0xff] }
   0x2   :  { %938 = vmatprep.subr.mxu0 %v37_v0  ;;  %v34_v3 = vld [vmem:[%s1538_s1 + $0x60] sm:$0xff]  ;;  %v33_v5 = vld [vmem:[%s1538_s1 + $0x58] sm:$0xff]  ;;  %v32_v6 = vld [vmem:[%s1538_s1 + $0x50] sm:$0xff] }
   0x3   :  { %939 = vmatpush3.msra.mxu0 %v37_v0  ;;  %v14_v4 = vld [vmem:[%s1539_s0] sm:$0xff]  ;;  %v31_v7 = vld [vmem:[%s1538_s1 + $0x48] sm:$0xff]  ;;  %v29_v9 = vld [vmem:[%s1538_s1 + $0x38] sm:$0xff] }
   0x4   :  { %940 = vmatprep.subr.mxu0 %v36_v1  ;;  %970 = vmatprep.mubr.f32.mxu0 %v14_v4  ;;  %v30_v8 = vld [vmem:[%s1538_s1 + $0x40] sm:$0xff]  ;;  %v28_v10 = vld [vmem:[%s1538_s1 + $0x30] sm:$0xff]  ;;  %v27_v11 = vld [vmem:[%s1538_s1 + $0x28] sm:$0xff] }
   0x5   :  { %941 = vmatpush3.msra.mxu0 %v36_v1  ;;  %v26_v12 = vld [vmem:[%s1538_s1 + $0x20] sm:$0xff]  ;;  %v25_v13 = vld [vmem:[%s1538_s1 + $0x18] sm:$0xff]  ;;  %v24_v14 = vld [vmem:[%s1538_s1 + $0x10] sm:$0xff] }
   0x6   :  { %942 = vmatprep.subr.mxu0 %v35_v2  ;;  %v23_v15 = vld [vmem:[%s1538_s1 + $0x8] sm:$0xff]  ;;  %v22_v16 = vld [vmem:[%s1538_s1] sm:$0xff]  ;;  %v16_v18 = vld [vmem:[%s1539_s0 + $0x10] sm:$0xff] }
   0x7   :  { %943 = vmatpush3.msra.mxu0 %v35_v2  ;;  %v15_v17 = vld [vmem:[%s1539_s0 + $0x8] sm:$0xff]  ;;  %v17_v19 = vld [vmem:[%s1539_s0 + $0x18] sm:$0xff]  ;;  %v18_v20 = vld [vmem:[%s1539_s0 + $0x20] sm:$0xff] }
   0x8   :  { %944 = vmatprep.subr.mxu0 %v34_v3  ;;  %v19_v21 = vld [vmem:[%s1539_s0 + $0x28] sm:$0xff]  ;;  %v20_v22 = vld [vmem:[%s1539_s0 + $0x30] sm:$0xff]  ;;  %v21_v23 = vld [vmem:[%s1539_s0 + $0x38] sm:$0xff] }
   0x9   :  { %945 = vmatpush3.msra.mxu0 %v34_v3  ;;  %v806_v24 = vld [vmem:[%s1538_s1 + $0xf8] sm:$0xff]  ;;  %v805_v25 = vld [vmem:[%s1538_s1 + $0xf0] sm:$0xff]  ;;  %v804_v26 = vld [vmem:[%s1538_s1 + $0xe8] sm:$0xff] }
   0xa   :  { %946 = vmatprep.subr.mxu0 %v33_v5  ;;  %982 = vmatprep.subr.mxu1 %v806_v24  ;;  %v803_v27 = vld [vmem:[%s1538_s1 + $0xe0] sm:$0xff]  ;;  %v802_v28 = vld [vmem:[%s1538_s1 + $0xd8] sm:$0xff]  ;;  %v801_v29 = vld [vmem:[%s1538_s1 + $0xd0] sm:$0xff] }
   0xb   :  { %947 = vmatpush3.msra.mxu0 %v33_v5  ;;  %983 = vmatpush3.msra.mxu1 %v806_v24  ;;  %v800_v30 = vld [vmem:[%s1538_s1 + $0xc8] sm:$0xff]  ;;  %v799_v31 = vld [vmem:[%s1538_s1 + $0xc0] sm:$0xff]  ;;  %v798_v32 = vld [vmem:[%s1538_s1 + $0xb8] sm:$0xff] }
   0xc   :  { %948 = vmatprep.subr.mxu0 %v32_v6  ;;  %984 = vmatprep.subr.mxu1 %v805_v25  ;;  %v797_v33 = vld [vmem:[%s1538_s1 + $0xb0] sm:$0xff]  ;;  %v796_v34 = vld [vmem:[%s1538_s1 + $0xa8] sm:$0xff]  ;;  %v795_v35 = vld [vmem:[%s1538_s1 + $0xa0] sm:$0xff] }
   0xd   :  { %949 = vmatpush3.msra.mxu0 %v32_v6  ;;  %985 = vmatpush3.msra.mxu1 %v805_v25  ;;  %v794_v36 = vld [vmem:[%s1538_s1 + $0x98] sm:$0xff]  ;;  %v793_v37 = vld [vmem:[%s1538_s1 + $0x90] sm:$0xff]  ;;  %v792_v38 = vld [vmem:[%s1538_s1 + $0x88] sm:$0xff] }
   0xe   :  { %950 = vmatprep.subr.mxu0 %v31_v7  ;;  %986 = vmatprep.subr.mxu1 %v804_v26  ;;  %v791_v39 = vld [vmem:[%s1538_s1 + $0x80] sm:$0xff] }
   0xf   :  { %951 = vmatpush3.msra.mxu0 %v31_v7  ;;  %987 = vmatpush3.msra.mxu1 %v804_v26  ;;  %v790_v41 = vld [vmem:[%s1540_s2] ss:$0 sm:$0xff] }
  0x10   :  { %952 = vmatprep.subr.mxu0 %v30_v8  ;;  %988 = vmatprep.subr.mxu1 %v803_v27 }
  0x11   :  { %953 = vmatpush3.msra.mxu0 %v30_v8  ;;  %989 = vmatpush3.msra.mxu1 %v803_v27 }
  0x12   :  { %954 = vmatprep.subr.mxu0 %v29_v9  ;;  %990 = vmatprep.subr.mxu1 %v802_v28 }
  0x13   :  { %955 = vmatpush3.msra.mxu0 %v29_v9  ;;  %991 = vmatpush3.msra.mxu1 %v802_v28 }
  0x14   :  { %956 = vmatprep.subr.mxu0 %v28_v10  ;;  %992 = vmatprep.subr.mxu1 %v801_v29 }
  0x15   :  { %957 = vmatpush3.msra.mxu0 %v28_v10  ;;  %993 = vmatpush3.msra.mxu1 %v801_v29 }
  0x16   :  { %958 = vmatprep.subr.mxu0 %v27_v11  ;;  %994 = vmatprep.subr.mxu1 %v800_v30 }
  0x17   :  { %959 = vmatpush3.msra.mxu0 %v27_v11  ;;  %995 = vmatpush3.msra.mxu1 %v800_v30 }
  0x18   :  { %960 = vmatprep.subr.mxu0 %v26_v12  ;;  %996 = vmatprep.subr.mxu1 %v799_v31 }
  0x19   :  { %961 = vmatpush3.msra.mxu0 %v26_v12  ;;  %997 = vmatpush3.msra.mxu1 %v799_v31 }
  0x1a   :  { %962 = vmatprep.subr.mxu0 %v25_v13  ;;  %998 = vmatprep.subr.mxu1 %v798_v32 }
  0x1b   :  { %963 = vmatpush3.msra.mxu0 %v25_v13  ;;  %999 = vmatpush3.msra.mxu1 %v798_v32 }
  0x1c   :  { %964 = vmatprep.subr.mxu0 %v24_v14  ;;  %1000 = vmatprep.subr.mxu1 %v797_v33 }
  0x1d   :  { %965 = vmatpush3.msra.mxu0 %v24_v14  ;;  %1001 = vmatpush3.msra.mxu1 %v797_v33 }
  0x1e   :  { %966 = vmatprep.subr.mxu0 %v23_v15  ;;  %1002 = vmatprep.subr.mxu1 %v796_v34 }
  0x1f   :  { %967 = vmatpush3.msra.mxu0 %v23_v15  ;;  %1003 = vmatpush3.msra.mxu1 %v796_v34 }
  0x20   :  { %968 = vmatprep.subr.mxu0 %v22_v16  ;;  %1004 = vmatprep.subr.mxu1 %v795_v35 }
  0x21   :  { %969 = vmatpush3.msra.mxu0 %v22_v16  ;;  %1005 = vmatpush3.msra.mxu1 %v795_v35 }
  0x22   :  { %971 = vmatmul.mubr.f32.vlgmr.msra.gmra.mxu0 %v15_v17  ;;  %1006 = vmatprep.subr.mxu1 %v794_v36 }
  0x23   :  { %973 = vmatprep.mubr.f32.mxu0 %v16_v18  ;;  %1007 = vmatpush3.msra.mxu1 %v794_v36 }
  0x24   :  { %1008 = vmatprep.subr.mxu1 %v793_v37 }
  0x25   :  { %1009 = vmatpush3.msra.mxu1 %v793_v37 }
  0x26   :  { %974 = vmatmul.mubr.f32.gmra.mxu0 %v17_v19  ;;  %1010 = vmatprep.subr.mxu1 %v792_v38 }
  0x27   :  { %976 = vmatprep.mubr.f32.mxu0 %v18_v20  ;;  %1011 = vmatpush3.msra.mxu1 %v792_v38  ;;  %v199_v38 = vlaneseq }
  0x28   :  { %1012 = vmatprep.subr.mxu1 %v791_v39 }
  0x29   :  { %1013 = vmatpush3.msra.mxu1 %v791_v39  ;;  %v200_v39 = vshrl.u32 %v199_v38, 7 }
  0x2a   :  { %977 = vmatmul.mubr.f32.gmra.mxu0 %v19_v21 }
  0x2b   :  { %979 = vmatprep.mubr.f32.mxu0 %v20_v22 }
  0x2e   :  { %980 = vmatmul.mubr.f32.gmra.mxu0 %v21_v23 }
  0xe2   :  { %v972_v40 = vpop.f32.mrf.mxu0 }
  0xe3   :  { %v1265_v45 = vadd.f32 %v972_v40, %v790_v41  ;;  %v192_v40 = vld [vmem:[%s1540_s2 + $0x4] sm:$0x1] }
  0xe4   :  { %v109_v42 = vpop.f32.mrf.mxu0 }
  0xe5   :  { %v1263_v43 = vadd.f32 %v790_v41, %v109_v42 }
  0xe6   :  { %v975_v44 = vpop.f32.mrf.mxu0 }
  0xe7   :  { %v148_v47 = vadd.f32 %v1265_v45, %v1263_v43  ;;  %v1271_v50 = vadd.f32 %v975_v44, %v790_v41 }
  0xe8   :  { %v119_v46 = vpop.f32.mrf.mxu0 }
  0xe9   :  { %v1269_v48 = vadd.f32 %v790_v41, %v119_v46  ;;  %v196_v46 = vld [vmem:[%s1540_s2 + $0x7] sm:$0x1] }
  0xea   :  { %v978_v49 = vpop.f32.mrf.mxu0 }
  0xeb   :  { %v149_v51 = vadd.f32 %v148_v47, %v1269_v48  ;;  %v1277_v56 = vadd.f32 %v978_v49, %v790_v41 }
  0xec   :  { %v129_v52 = vpop.f32.mrf.mxu0 }
  0xed   :  { %v1274_v53 = vadd.f32 %v790_v41, %v129_v52  ;;  %v150_v54 = vadd.f32 %v149_v51, %v1271_v50 }
  0xee   :  { %v981_v55 = vpop.f32.mrf.mxu0 }
  0xef   :  { %v151_v57 = vadd.f32 %v150_v54, %v1274_v53  ;;  %v1283_v61 = vadd.f32 %v981_v55, %v790_v41 }
  0xf0   :  { %v139_v58 = vpop.f32.mrf.mxu0 }
  0xf1   :  { %v1280_v59 = vadd.f32 %v790_v41, %v139_v58  ;;  %v152_v60 = vadd.f32 %v151_v57, %v1277_v56  ;;  %v1298_v41 = vsub.s32 0, %v200_v39 }
  0xf3   :  { %v153_v62 = vadd.f32 %v152_v60, %v1280_v59 }
  0xf5   :  { %v154_v63 = vadd.f32 %v153_v62, %v1283_v61 }
  0xf7   :  { %v155_v0 = vrot.slane %v154_v63, 4 }
  0xf9   :  { %v156_v1 = vadd.f32 %v155_v0, %v154_v63 }
  0xfb   :  { %v157_v2 = vrot.slane %v156_v1, 2 }
  0xfd   :  { %v158_v3 = vadd.f32 %v157_v2, %v156_v1 }
  0xff   :  { %v159_v4 = vrot.slane %v158_v3, 1 }
 0x101   :  { %v160_v5 = vadd.f32 %v159_v4, %v158_v3 }
 0x103   :  { %v161_v6 = vmul.f32 0.015625, %v160_v5 }
 0x105   :  { %v162_v7 = vsub.f32 %v1263_v43, %v161_v6  ;;  %v163_v8 = vsub.f32 %v1265_v45, %v161_v6  ;;  %v164_v9 = vsub.f32 %v1269_v48, %v161_v6  ;;  %v165_v10 = vsub.f32 %v1271_v50, %v161_v6 }
 0x106   :  { %v166_v13 = vsub.f32 %v1274_v53, %v161_v6  ;;  %v167_v16 = vsub.f32 %v1277_v56, %v161_v6  ;;  %v168_v19 = vsub.f32 %v1280_v59, %v161_v6  ;;  %v169_v22 = vsub.f32 %v1283_v61, %v161_v6 }
 0x107   :  { %v170_v11 = vmul.f32 %v162_v7, %v162_v7  ;;  %v171_v12 = vmul.f32 %v163_v8, %v163_v8  ;;  %v172_v14 = vmul.f32 %v164_v9, %v164_v9  ;;  %v173_v17 = vmul.f32 %v165_v10, %v165_v10 }
 0x108   :  { %v174_v20 = vmul.f32 %v166_v13, %v166_v13  ;;  %v175_v23 = vmul.f32 %v167_v16, %v167_v16  ;;  %v176_v25 = vmul.f32 %v168_v19, %v168_v19  ;;  %v177_v27 = vmul.f32 %v169_v22, %v169_v22  ;;  %v819_v13 = vld [vmem:[%s1538_s1 + $0x158] sm:$0xff]  ;;  %v816_v16 = vld [vmem:[%s1538_s1 + $0x140] sm:$0xff]  ;;  %v813_v19 = vld [vmem:[%s1538_s1 + $0x128] sm:$0xff] }
 0x109   :  { %v178_v15 = vadd.f32 %v171_v12, %v170_v11  ;;  %v820_v12 = vld [vmem:[%s1538_s1 + $0x160] sm:$0xff]  ;;  %v810_v22 = vld [vmem:[%s1538_s1 + $0x110] sm:$0xff] }
 0x10b   :  { %v179_v18 = vadd.f32 %v178_v15, %v172_v14  ;;  %v818_v14 = vld [vmem:[%s1538_s1 + $0x150] sm:$0xff]  ;;  %v817_v15 = vld [vmem:[%s1538_s1 + $0x148] sm:$0xff] }
 0x10d   :  { %v180_v21 = vadd.f32 %v179_v18, %v173_v17  ;;  %v815_v17 = vld [vmem:[%s1538_s1 + $0x138] sm:$0xff]  ;;  %v814_v18 = vld [vmem:[%s1538_s1 + $0x130] sm:$0xff] }
 0x10f   :  { %v181_v24 = vadd.f32 %v180_v21, %v174_v20  ;;  %v812_v20 = vld [vmem:[%s1538_s1 + $0x120] sm:$0xff]  ;;  %v811_v21 = vld [vmem:[%s1538_s1 + $0x118] sm:$0xff] }
 0x111   :  { %v182_v26 = vadd.f32 %v181_v24, %v175_v23  ;;  %v809_v23 = vld [vmem:[%s1538_s1 + $0x108] sm:$0xff]  ;;  %v808_v24 = vld [vmem:[%s1538_s1 + $0x100] sm:$0xff] }
 0x113   :  { %v183_v28 = vadd.f32 %v182_v26, %v176_v25  ;;  %v807_v26 = vld [vmem:[%s1540_s2 + $0x1] ss:$0 sm:$0xff] }
 0x115   :  { %v184_v29 = vadd.f32 %v183_v28, %v177_v27 }
 0x117   :  { %v185_v30 = vrot.slane %v184_v29, 4 }
 0x119   :  { %v186_v31 = vadd.f32 %v185_v30, %v184_v29 }
 0x11b   :  { %v187_v32 = vrot.slane %v186_v31, 2 }
 0x11d   :  { %v188_v33 = vadd.f32 %v187_v32, %v186_v31 }
 0x11f   :  { %v189_v34 = vrot.slane %v188_v33, 1 }
 0x121   :  { %v190_v35 = vadd.f32 %v189_v34, %v188_v33 }
 0x123   :  { %v191_v36 = vmul.f32 0.015625, %v190_v35 }
 0x125   :  { %v193_v37 = vadd.f32 1e-05, %v191_v36 }
 0x127   :  { %1114 = vrsqrt.f32 %v193_v37 }
 0x134   :  { %v1115_v42 = vpop.eup %1114 }
 0x135   :  { %v195_v44 = vmul.f32 %v1115_v42, %v192_v40 }
 0x137   :  { %v197_v47 = vmul.f32 %v195_v44, %v161_v6  ;;  %v202_v49 = vrot.slane %v195_v44, %v1298_v41 }
 0x139   :  { %v198_v51 = vsub.f32 %v196_v46, %v197_v47  ;;  %v203_v52 = vmul.f32 %v202_v49, %v1263_v43  ;;  %v204_v55 = vmul.f32 %v202_v49, %v1265_v45  ;;  %v205_v57 = vmul.f32 %v202_v49, %v1269_v48 }
 0x13a   :  { %v206_v63 = vmul.f32 %v202_v49, %v1271_v50  ;;  %v207_v2 = vmul.f32 %v202_v49, %v1274_v53  ;;  %v208_v43 = vmul.f32 %v202_v49, %v1277_v56  ;;  %v209_v45 = vmul.f32 %v202_v49, %v1280_v59  ;;  %v823_v56 = vld [vmem:[%s1538_s1 + $0x178] sm:$0xff]  ;;  %v822_v59 = vld [vmem:[%s1538_s1 + $0x170] sm:$0xff] }
 0x13b   :  { %v214_v54 = vrot.slane %v198_v51, %v1298_v41  ;;  %v210_v50 = vmul.f32 %v202_v49, %v1283_v61  ;;  %1026 = vmatprep.subr.mxu0 %v823_v56  ;;  %v821_v61 = vld [vmem:[%s1538_s1 + $0x168] sm:$0xff] }
 0x13c   :  { %1027 = vmatpush3.msra.mxu0 %v823_v56 }
 0x13d   :  { %v215_v58 = vadd.f32 %v214_v54, %v203_v52  ;;  %v216_v60 = vadd.f32 %v214_v54, %v204_v55  ;;  %v217_v62 = vadd.f32 %v214_v54, %v205_v57  ;;  %v218_v3 = vadd.f32 %v214_v54, %v206_v63  ;;  %1028 = vmatprep.subr.mxu0 %v822_v59 }
 0x13e   :  { %v219_v5 = vadd.f32 %v214_v54, %v207_v2  ;;  %v220_v6 = vadd.f32 %v214_v54, %v208_v43  ;;  %v221_v8 = vadd.f32 %v214_v54, %v209_v45  ;;  %v222_v53 = vadd.f32 %v214_v54, %v210_v50  ;;  %1029 = vmatpush3.msra.mxu0 %v822_v59 }
 0x13f   :  { %v223_v0 = vmax.f32 %v215_v58, 0.0  ;;  %v224_v1 = vmax.f32 %v216_v60, 0.0  ;;  %v225_v4 = vmax.f32 %v217_v62, 0.0  ;;  %v226_v48 = vmax.f32 %v218_v3, 0.0  ;;  %1030 = vmatprep.subr.mxu0 %v821_v61 }
 0x140   :  { %v227_v7 = vmax.f32 %v219_v5, 0.0  ;;  %v228_v9 = vmax.f32 %v220_v6, 0.0  ;;  %v229_v10 = vmax.f32 %v221_v8, 0.0  ;;  %v230_v11 = vmax.f32 %v222_v53, 0.0  ;;  %1031 = vmatpush3.msra.mxu0 %v821_v61 }
 0x141   :  { %1014 = vmatprep.mubr.f32.mxu1 %v223_v0  ;;  %1032 = vmatprep.subr.mxu0 %v820_v12 }
 0x142   :  { %1015 = vmatmul.mubr.f32.vlgmr.msra.gmra.mxu1 %v224_v1  ;;  %1033 = vmatpush3.msra.mxu0 %v820_v12 }
 0x143   :  { %1017 = vmatprep.mubr.f32.mxu1 %v225_v4  ;;  %1034 = vmatprep.subr.mxu0 %v819_v13 }
 0x144   :  { %1035 = vmatpush3.msra.mxu0 %v819_v13 }
 0x145   :  { %1036 = vmatprep.subr.mxu0 %v818_v14 }
 0x146   :  { %1018 = vmatmul.mubr.f32.gmra.mxu1 %v226_v48  ;;  %1037 = vmatpush3.msra.mxu0 %v818_v14 }
 0x147   :  { %1020 = vmatprep.mubr.f32.mxu1 %v227_v7  ;;  %1038 = vmatprep.subr.mxu0 %v817_v15 }
 0x148   :  { %1039 = vmatpush3.msra.mxu0 %v817_v15 }
 0x149   :  { %1040 = vmatprep.subr.mxu0 %v816_v16 }
 0x14a   :  { %1021 = vmatmul.mubr.f32.gmra.mxu1 %v228_v9  ;;  %1041 = vmatpush3.msra.mxu0 %v816_v16 }
 0x14b   :  { %1023 = vmatprep.mubr.f32.mxu1 %v229_v10  ;;  %1042 = vmatprep.subr.mxu0 %v815_v17 }
 0x14c   :  { %1043 = vmatpush3.msra.mxu0 %v815_v17 }
 0x14d   :  { %1044 = vmatprep.subr.mxu0 %v814_v18 }
 0x14e   :  { %1024 = vmatmul.mubr.f32.gmra.mxu1 %v230_v11  ;;  %1045 = vmatpush3.msra.mxu0 %v814_v18 }
 0x14f   :  { %1046 = vmatprep.subr.mxu0 %v813_v19 }
 0x150   :  { %1047 = vmatpush3.msra.mxu0 %v813_v19 }
 0x151   :  { %1048 = vmatprep.subr.mxu0 %v812_v20 }
 0x152   :  { %1049 = vmatpush3.msra.mxu0 %v812_v20 }
 0x153   :  { %1050 = vmatprep.subr.mxu0 %v811_v21 }
 0x154   :  { %1051 = vmatpush3.msra.mxu0 %v811_v21 }
 0x155   :  { %1052 = vmatprep.subr.mxu0 %v810_v22 }
 0x156   :  { %1053 = vmatpush3.msra.mxu0 %v810_v22 }
 0x157   :  { %1054 = vmatprep.subr.mxu0 %v809_v23 }
 0x158   :  { %1055 = vmatpush3.msra.mxu0 %v809_v23 }
 0x159   :  { %1056 = vmatprep.subr.mxu0 %v808_v24 }
 0x15a   :  { %1057 = vmatpush3.msra.mxu0 %v808_v24  ;;  %v402_v24 = vld [vmem:[%s1540_s2 + $0x5] sm:$0x1] }
 0x202   :  { %v1016_v25 = vpop.f32.mrf.mxu1 }
 0x203   :  { %v1366_v30 = vadd.f32 %v1016_v25, %v807_v26 }
 0x204   :  { %v319_v27 = vpop.f32.mrf.mxu1 }
 0x205   :  { %v1364_v28 = vadd.f32 %v807_v26, %v319_v27  ;;  %v406_v27 = vld [vmem:[%s1540_s2 + $0x8] sm:$0x1] }
 0x206   :  { %v1019_v29 = vpop.f32.mrf.mxu1 }
 0x207   :  { %v358_v32 = vadd.f32 %v1366_v30, %v1364_v28  ;;  %v1372_v35 = vadd.f32 %v1019_v29, %v807_v26 }
 0x208   :  { %v329_v31 = vpop.f32.mrf.mxu1 }
 0x209   :  { %v1370_v33 = vadd.f32 %v807_v26, %v329_v31 }
 0x20a   :  { %v1022_v34 = vpop.f32.mrf.mxu1 }
 0x20b   :  { %v359_v36 = vadd.f32 %v358_v32, %v1370_v33  ;;  %v1378_v42 = vadd.f32 %v1022_v34, %v807_v26 }
 0x20c   :  { %v339_v37 = vpop.f32.mrf.mxu1 }
 0x20d   :  { %v1375_v38 = vadd.f32 %v807_v26, %v339_v37  ;;  %v360_v39 = vadd.f32 %v359_v36, %v1372_v35 }
 0x20e   :  { %v1025_v40 = vpop.f32.mrf.mxu1 }
 0x20f   :  { %v361_v44 = vadd.f32 %v360_v39, %v1375_v38  ;;  %v1384_v51 = vadd.f32 %v1025_v40, %v807_v26 }
 0x210   :  { %v349_v46 = vpop.f32.mrf.mxu1 }
 0x211   :  { %v1381_v47 = vadd.f32 %v807_v26, %v349_v46  ;;  %v362_v49 = vadd.f32 %v361_v44, %v1378_v42 }
 0x213   :  { %v363_v52 = vadd.f32 %v362_v49, %v1381_v47 }
 0x215   :  { %v364_v54 = vadd.f32 %v363_v52, %v1384_v51 }
 0x217   :  { %v365_v55 = vrot.slane %v364_v54, 4 }
 0x219   :  { %v366_v57 = vadd.f32 %v365_v55, %v364_v54 }
 0x21b   :  { %v367_v58 = vrot.slane %v366_v57, 2 }
 0x21d   :  { %v368_v60 = vadd.f32 %v367_v58, %v366_v57 }
 0x21f   :  { %v369_v62 = vrot.slane %v368_v60, 1 }
 0x221   :  { %v370_v63 = vadd.f32 %v369_v62, %v368_v60 }
 0x223   :  { %v371_v0 = vmul.f32 0.015625, %v370_v63 }
 0x225   :  { %v372_v1 = vsub.f32 %v1364_v28, %v371_v0  ;;  %v373_v2 = vsub.f32 %v1366_v30, %v371_v0  ;;  %v374_v3 = vsub.f32 %v1370_v33, %v371_v0  ;;  %v375_v4 = vsub.f32 %v1372_v35, %v371_v0 }
 0x226   :  { %v376_v45 = vsub.f32 %v1375_v38, %v371_v0  ;;  %v377_v7 = vsub.f32 %v1378_v42, %v371_v0  ;;  %v378_v9 = vsub.f32 %v1381_v47, %v371_v0  ;;  %v379_v11 = vsub.f32 %v1384_v51, %v371_v0 }
 0x227   :  { %v380_v5 = vmul.f32 %v372_v1, %v372_v1  ;;  %v381_v43 = vmul.f32 %v373_v2, %v373_v2  ;;  %v382_v48 = vmul.f32 %v374_v3, %v374_v3  ;;  %v383_v8 = vmul.f32 %v375_v4, %v375_v4  ;;  %v837_v4 = vld [vmem:[%s1538_s1 + $0x1e0] sm:$0xff] }
 0x228   :  { %v384_v53 = vmul.f32 %v376_v45, %v376_v45  ;;  %v385_v56 = vmul.f32 %v377_v7, %v377_v7  ;;  %v386_v61 = vmul.f32 %v378_v9, %v378_v9  ;;  %v387_v13 = vmul.f32 %v379_v11, %v379_v11  ;;  %v834_v45 = vld [vmem:[%s1538_s1 + $0x1c8] sm:$0xff]  ;;  %v831_v7 = vld [vmem:[%s1538_s1 + $0x1b0] sm:$0xff]  ;;  %v828_v9 = vld [vmem:[%s1538_s1 + $0x198] sm:$0xff] }
 0x229   :  { %v388_v6 = vadd.f32 %v381_v43, %v380_v5  ;;  %v836_v5 = vld [vmem:[%s1538_s1 + $0x1d8] sm:$0xff]  ;;  %v835_v43 = vld [vmem:[%s1538_s1 + $0x1d0] sm:$0xff]  ;;  %v825_v11 = vld [vmem:[%s1538_s1 + $0x180] sm:$0xff] }
 0x22b   :  { %v389_v50 = vadd.f32 %v388_v6, %v382_v48  ;;  %v833_v48 = vld [vmem:[%s1538_s1 + $0x1c0] sm:$0xff]  ;;  %v832_v6 = vld [vmem:[%s1538_s1 + $0x1b8] sm:$0xff] }
 0x22d   :  { %v390_v10 = vadd.f32 %v389_v50, %v383_v8  ;;  %v830_v8 = vld [vmem:[%s1538_s1 + $0x1a8] sm:$0xff]  ;;  %v829_v50 = vld [vmem:[%s1538_s1 + $0x1a0] sm:$0xff] }
 0x22f   :  { %v391_v59 = vadd.f32 %v390_v10, %v384_v53  ;;  %v827_v53 = vld [vmem:[%s1538_s1 + $0x190] sm:$0xff]  ;;  %v826_v10 = vld [vmem:[%s1538_s1 + $0x188] sm:$0xff] }
 0x231   :  { %v392_v12 = vadd.f32 %v391_v59, %v385_v56  ;;  %v824_v59 = vld [vmem:[%s1540_s2 + $0x2] ss:$0 sm:$0xff] }
 0x233   :  { %v393_v14 = vadd.f32 %v392_v12, %v386_v61 }
 0x235   :  { %v394_v15 = vadd.f32 %v393_v14, %v387_v13 }
 0x237   :  { %v395_v16 = vrot.slane %v394_v15, 4 }
 0x239   :  { %v396_v17 = vadd.f32 %v395_v16, %v394_v15 }
 0x23b   :  { %v397_v18 = vrot.slane %v396_v17, 2 }
 0x23d   :  { %v398_v19 = vadd.f32 %v397_v18, %v396_v17 }
 0x23f   :  { %v399_v20 = vrot.slane %v398_v19, 1 }
 0x241   :  { %v400_v21 = vadd.f32 %v399_v20, %v398_v19 }
 0x243   :  { %v401_v22 = vmul.f32 0.015625, %v400_v21 }
 0x245   :  { %v403_v23 = vadd.f32 1e-05, %v401_v22 }
 0x247   :  { %1116 = vrsqrt.f32 %v403_v23 }
 0x254   :  { %v1117_v25 = vpop.eup %1116 }
 0x255   :  { %v405_v26 = vmul.f32 %v1117_v25, %v402_v24 }
 0x257   :  { %v407_v29 = vmul.f32 %v405_v26, %v371_v0  ;;  %v412_v31 = vrot.slane %v405_v26, %v1298_v41 }
 0x259   :  { %v408_v32 = vsub.f32 %v406_v27, %v407_v29  ;;  %v413_v34 = vmul.f32 %v412_v31, %v1364_v28  ;;  %v414_v37 = vmul.f32 %v412_v31, %v1366_v30  ;;  %v415_v39 = vmul.f32 %v412_v31, %v1370_v33 }
 0x25a   :  { %v416_v49 = vmul.f32 %v412_v31, %v1372_v35  ;;  %v417_v55 = vmul.f32 %v412_v31, %v1375_v38  ;;  %v418_v28 = vmul.f32 %v412_v31, %v1378_v42  ;;  %v419_v30 = vmul.f32 %v412_v31, %v1381_v47  ;;  %v840_v42 = vld [vmem:[%s1538_s1 + $0x1f8] sm:$0xff]  ;;  %v839_v47 = vld [vmem:[%s1538_s1 + $0x1f0] sm:$0xff] }
 0x25b   :  { %v424_v36 = vrot.slane %v408_v32, %v1298_v41  ;;  %v420_v35 = vmul.f32 %v412_v31, %v1384_v51  ;;  %1070 = vmatprep.subr.mxu1 %v840_v42  ;;  %v838_v51 = vld [vmem:[%s1538_s1 + $0x1e8] sm:$0xff] }
 0x25c   :  { %1071 = vmatpush3.msra.mxu1 %v840_v42 }
 0x25d   :  { %v425_v40 = vadd.f32 %v424_v36, %v413_v34  ;;  %v426_v44 = vadd.f32 %v424_v36, %v414_v37  ;;  %v427_v46 = vadd.f32 %v424_v36, %v415_v39  ;;  %v428_v57 = vadd.f32 %v424_v36, %v416_v49  ;;  %1072 = vmatprep.subr.mxu1 %v839_v47 }
 0x25e   :  { %v429_v60 = vadd.f32 %v424_v36, %v417_v55  ;;  %v430_v62 = vadd.f32 %v424_v36, %v418_v28  ;;  %v431_v0 = vadd.f32 %v424_v36, %v419_v30  ;;  %v432_v38 = vadd.f32 %v424_v36, %v420_v35  ;;  %1073 = vmatpush3.msra.mxu1 %v839_v47 }
 0x25f   :  { %v433_v52 = vmax.f32 %v425_v40, 0.0  ;;  %v434_v54 = vmax.f32 %v426_v44, 0.0  ;;  %v435_v58 = vmax.f32 %v427_v46, 0.0  ;;  %v436_v33 = vmax.f32 %v428_v57, 0.0  ;;  %1074 = vmatprep.subr.mxu1 %v838_v51 }
 0x260   :  { %v437_v63 = vmax.f32 %v429_v60, 0.0  ;;  %v438_v1 = vmax.f32 %v430_v62, 0.0  ;;  %v439_v2 = vmax.f32 %v431_v0, 0.0  ;;  %v440_v3 = vmax.f32 %v432_v38, 0.0  ;;  %1075 = vmatpush3.msra.mxu1 %v838_v51 }
 0x261   :  { %1058 = vmatprep.mubr.f32.mxu0 %v433_v52  ;;  %1076 = vmatprep.subr.mxu1 %v837_v4 }
 0x262   :  { %1059 = vmatmul.mubr.f32.vlgmr.msra.gmra.mxu0 %v434_v54  ;;  %1077 = vmatpush3.msra.mxu1 %v837_v4 }
 0x263   :  { %1061 = vmatprep.mubr.f32.mxu0 %v435_v58  ;;  %1078 = vmatprep.subr.mxu1 %v836_v5 }
 0x264   :  { %1079 = vmatpush3.msra.mxu1 %v836_v5 }
 0x265   :  { %1080 = vmatprep.subr.mxu1 %v835_v43 }
 0x266   :  { %1062 = vmatmul.mubr.f32.gmra.mxu0 %v436_v33  ;;  %1081 = vmatpush3.msra.mxu1 %v835_v43 }
 0x267   :  { %1064 = vmatprep.mubr.f32.mxu0 %v437_v63  ;;  %1082 = vmatprep.subr.mxu1 %v834_v45 }
 0x268   :  { %1083 = vmatpush3.msra.mxu1 %v834_v45 }
 0x269   :  { %1084 = vmatprep.subr.mxu1 %v833_v48 }
 0x26a   :  { %1065 = vmatmul.mubr.f32.gmra.mxu0 %v438_v1  ;;  %1085 = vmatpush3.msra.mxu1 %v833_v48 }
 0x26b   :  { %1067 = vmatprep.mubr.f32.mxu0 %v439_v2  ;;  %1086 = vmatprep.subr.mxu1 %v832_v6 }
 0x26c   :  { %1087 = vmatpush3.msra.mxu1 %v832_v6 }
 0x26d   :  { %1088 = vmatprep.subr.mxu1 %v831_v7 }
 0x26e   :  { %1068 = vmatmul.mubr.f32.gmra.mxu0 %v440_v3  ;;  %1089 = vmatpush3.msra.mxu1 %v831_v7 }
 0x26f   :  { %1090 = vmatprep.subr.mxu1 %v830_v8 }
 0x270   :  { %1091 = vmatpush3.msra.mxu1 %v830_v8 }
 0x271   :  { %1092 = vmatprep.subr.mxu1 %v829_v50 }
 0x272   :  { %1093 = vmatpush3.msra.mxu1 %v829_v50 }
 0x273   :  { %1094 = vmatprep.subr.mxu1 %v828_v9 }
 0x274   :  { %1095 = vmatpush3.msra.mxu1 %v828_v9 }
 0x275   :  { %1096 = vmatprep.subr.mxu1 %v827_v53 }
 0x276   :  { %1097 = vmatpush3.msra.mxu1 %v827_v53 }
 0x277   :  { %1098 = vmatprep.subr.mxu1 %v826_v10 }
 0x278   :  { %1099 = vmatpush3.msra.mxu1 %v826_v10 }
 0x279   :  { %1100 = vmatprep.subr.mxu1 %v825_v11 }
 0x27a   :  { %1101 = vmatpush3.msra.mxu1 %v825_v11  ;;  %v612_v11 = vld [vmem:[%s1540_s2 + $0x6] sm:$0x1] }
 0x322   :  { %v1060_v56 = vpop.f32.mrf.mxu0 }
 0x323   :  { %v1465_v14 = vadd.f32 %v1060_v56, %v824_v59 }
 0x324   :  { %v529_v61 = vpop.f32.mrf.mxu0 }
 0x325   :  { %v1463_v12 = vadd.f32 %v824_v59, %v529_v61  ;;  %v616_v61 = vld [vmem:[%s1540_s2 + $0x9] sm:$0x1] }
 0x326   :  { %v1063_v13 = vpop.f32.mrf.mxu0 }
 0x327   :  { %v568_v16 = vadd.f32 %v1465_v14, %v1463_v12  ;;  %v1471_v19 = vadd.f32 %v1063_v13, %v824_v59 }
 0x328   :  { %v539_v15 = vpop.f32.mrf.mxu0 }
 0x329   :  { %v1469_v17 = vadd.f32 %v824_v59, %v539_v15 }
 0x32a   :  { %v1066_v18 = vpop.f32.mrf.mxu0 }
 0x32b   :  { %v569_v20 = vadd.f32 %v568_v16, %v1469_v17  ;;  %v1477_v25 = vadd.f32 %v1066_v18, %v824_v59 }
 0x32c   :  { %v549_v21 = vpop.f32.mrf.mxu0 }
 0x32d   :  { %v1474_v22 = vadd.f32 %v824_v59, %v549_v21  ;;  %v570_v23 = vadd.f32 %v569_v20, %v1471_v19 }
 0x32e   :  { %v1069_v24 = vpop.f32.mrf.mxu0 }
 0x32f   :  { %v571_v26 = vadd.f32 %v570_v23, %v1474_v22  ;;  %v1483_v32 = vadd.f32 %v1069_v24, %v824_v59 }
 0x330   :  { %v559_v27 = vpop.f32.mrf.mxu0 }
 0x331   :  { %v1480_v29 = vadd.f32 %v824_v59, %v559_v27  ;;  %v572_v31 = vadd.f32 %v571_v26, %v1477_v25 }
 0x333   :  { %v573_v34 = vadd.f32 %v572_v31, %v1480_v29 }
 0x335   :  { %v574_v36 = vadd.f32 %v573_v34, %v1483_v32 }
 0x337   :  { %v575_v37 = vrot.slane %v574_v36, 4 }
 0x339   :  { %v576_v39 = vadd.f32 %v575_v37, %v574_v36 }
 0x33b   :  { %v577_v40 = vrot.slane %v576_v39, 2 }
 0x33d   :  { %v578_v44 = vadd.f32 %v577_v40, %v576_v39 }
 0x33f   :  { %v579_v46 = vrot.slane %v578_v44, 1 }
 0x341   :  { %v580_v49 = vadd.f32 %v579_v46, %v578_v44 }
 0x343   :  { %v581_v52 = vmul.f32 0.015625, %v580_v49 }
 0x345   :  { %v582_v54 = vsub.f32 %v1463_v12, %v581_v52  ;;  %v583_v55 = vsub.f32 %v1465_v14, %v581_v52  ;;  %v584_v57 = vsub.f32 %v1469_v17, %v581_v52  ;;  %v585_v58 = vsub.f32 %v1471_v19, %v581_v52 }
 0x346   :  { %v586_v30 = vsub.f32 %v1474_v22, %v581_v52  ;;  %v587_v63 = vsub.f32 %v1477_v25, %v581_v52  ;;  %v588_v1 = vsub.f32 %v1480_v29, %v581_v52  ;;  %v589_v3 = vsub.f32 %v1483_v32, %v581_v52 }
 0x347   :  { %v590_v60 = vmul.f32 %v582_v54, %v582_v54  ;;  %v591_v28 = vmul.f32 %v583_v55, %v583_v55  ;;  %v592_v33 = vmul.f32 %v584_v57, %v584_v57  ;;  %v593_v0 = vmul.f32 %v585_v58, %v585_v58 }
 0x348   :  { %v594_v38 = vmul.f32 %v586_v30, %v586_v30  ;;  %v595_v42 = vmul.f32 %v587_v63, %v587_v63  ;;  %v596_v51 = vmul.f32 %v588_v1, %v588_v1  ;;  %v597_v5 = vmul.f32 %v589_v3, %v589_v3 }
 0x349   :  { %v598_v62 = vadd.f32 %v591_v28, %v590_v60 }
 0x34b   :  { %v599_v35 = vadd.f32 %v598_v62, %v592_v33 }
 0x34d   :  { %v600_v2 = vadd.f32 %v599_v35, %v593_v0 }
 0x34f   :  { %v601_v47 = vadd.f32 %v600_v2, %v594_v38 }
 0x351   :  { %v602_v4 = vadd.f32 %v601_v47, %v595_v42 }
 0x353   :  { %v603_v43 = vadd.f32 %v602_v4, %v596_v51 }
 0x355   :  { %v604_v45 = vadd.f32 %v603_v43, %v597_v5 }
 0x357   :  { %v605_v48 = vrot.slane %v604_v45, 4 }
 0x359   :  { %v606_v6 = vadd.f32 %v605_v48, %v604_v45 }
 0x35b   :  { %v607_v7 = vrot.slane %v606_v6, 2 }
 0x35d   :  { %v608_v8 = vadd.f32 %v607_v7, %v606_v6 }
 0x35f   :  { %v609_v50 = vrot.slane %v608_v8, 1 }
 0x361   :  { %v610_v9 = vadd.f32 %v609_v50, %v608_v8 }
 0x363   :  { %v611_v53 = vmul.f32 0.015625, %v610_v9 }
 0x365   :  { %v613_v10 = vadd.f32 1e-05, %v611_v53 }
 0x367   :  { %1118 = vrsqrt.f32 %v613_v10 }
 0x374   :  { %v1119_v56 = vpop.eup %1118 }
 0x375   :  { %v615_v59 = vmul.f32 %v1119_v56, %v612_v11 }
 0x377   :  { %v617_v13 = vmul.f32 %v615_v59, %v581_v52  ;;  %v622_v15 = vrot.slane %v615_v59, %v1298_v41 }
 0x379   :  { %v618_v16 = vsub.f32 %v616_v61, %v617_v13  ;;  %v623_v18 = vmul.f32 %v622_v15, %v1463_v12  ;;  %v624_v21 = vmul.f32 %v622_v15, %v1465_v14  ;;  %v625_v23 = vmul.f32 %v622_v15, %v1469_v17 }
 0x37a   :  { %v626_v31 = vmul.f32 %v622_v15, %v1471_v19  ;;  %v627_v37 = vmul.f32 %v622_v15, %v1474_v22  ;;  %v629_v12 = vmul.f32 %v622_v15, %v1480_v29  ;;  %v630_v19 = vmul.f32 %v622_v15, %v1483_v32 }
 0x37b   :  { %v634_v20 = vrot.slane %v618_v16, %v1298_v41  ;;  %v628_v41 = vmul.f32 %v622_v15, %v1477_v25  ;;  %v841_v25 = vld [vmem:[%s1540_s2 + $0x3] ss:$0 sm:$0xff] }
 0x37d   :  { %v635_v24 = vadd.f32 %v634_v20, %v623_v18  ;;  %v636_v26 = vadd.f32 %v634_v20, %v624_v21  ;;  %v637_v27 = vadd.f32 %v634_v20, %v625_v23  ;;  %v638_v39 = vadd.f32 %v634_v20, %v626_v31 }
 0x37e   :  { %v639_v44 = vadd.f32 %v634_v20, %v627_v37  ;;  %v640_v17 = vadd.f32 %v634_v20, %v628_v41  ;;  %v641_v49 = vadd.f32 %v634_v20, %v629_v12  ;;  %v642_v22 = vadd.f32 %v634_v20, %v630_v19 }
 0x37f   :  { %v643_v34 = vmax.f32 %v635_v24, 0.0  ;;  %v644_v36 = vmax.f32 %v636_v26, 0.0  ;;  %v645_v40 = vmax.f32 %v637_v27, 0.0  ;;  %v646_v14 = vmax.f32 %v638_v39, 0.0 }
 0x380   :  { %v647_v46 = vmax.f32 %v639_v44, 0.0  ;;  %v648_v52 = vmax.f32 %v640_v17, 0.0  ;;  %v649_v54 = vmax.f32 %v641_v49, 0.0  ;;  %v650_v55 = vmax.f32 %v642_v22, 0.0 }
 0x381   :  { %1102 = vmatprep.mubr.f32.mxu1 %v643_v34 }
 0x382   :  { %1103 = vmatmul.mubr.f32.vlgmr.msra.gmra.mxu1 %v644_v36 }
 0x383   :  { %1105 = vmatprep.mubr.f32.mxu1 %v645_v40 }
 0x386   :  { %1106 = vmatmul.mubr.f32.gmra.mxu1 %v646_v14 }
 0x387   :  { %1108 = vmatprep.mubr.f32.mxu1 %v647_v46 }
 0x38a   :  { %1109 = vmatmul.mubr.f32.gmra.mxu1 %v648_v52 }
 0x38b   :  { %1111 = vmatprep.mubr.f32.mxu1 %v649_v54 }
 0x38e   :  { %1112 = vmatmul.mubr.f32.gmra.mxu1 %v650_v55 }
 0x442   :  { %v1104_v29 = vpop.f32.mrf.mxu1 }
 0x443   :  { %v745_v57 = vadd.f32 %v1104_v29, %v841_v25 }
 0x444   :  { %v739_v58 = vpop.f32.mrf.mxu1 }
 0x445   :  { %779 = vst [vmem:[%s1541_s3 + $0x8] sm:$0xff] %v745_v57  ;;  %v740_v32 = vadd.f32 %v841_v25, %v739_v58 }
 0x446   :  { %v1107_v60 = vpop.f32.mrf.mxu1 }
 0x447   :  { %778 = vst [vmem:[%s1541_s3] sm:$0xff] %v740_v32  ;;  %v755_v28 = vadd.f32 %v1107_v60, %v841_v25 }
 0x448   :  { %v749_v30 = vpop.f32.mrf.mxu1 }
 0x449   :  { %781 = vst [vmem:[%s1541_s3 + $0x18] sm:$0xff] %v755_v28  ;;  %v750_v33 = vadd.f32 %v841_v25, %v749_v30 }
 0x44a   :  { %v1110_v62 = vpop.f32.mrf.mxu1 }
 0x44b   :  { %780 = vst [vmem:[%s1541_s3 + $0x10] sm:$0xff] %v750_v33  ;;  %v765_v63 = vadd.f32 %v1110_v62, %v841_v25 }
 0x44c   :  { %v759_v0 = vpop.f32.mrf.mxu1 }
 0x44d   :  { %783 = vst [vmem:[%s1541_s3 + $0x28] sm:$0xff] %v765_v63  ;;  %v760_v35 = vadd.f32 %v841_v25, %v759_v0 }
 0x44e   :  { %v1113_v1 = vpop.f32.mrf.mxu1 }
 0x44f   :  { %782 = vst [vmem:[%s1541_s3 + $0x20] sm:$0xff] %v760_v35  ;;  %v775_v38 = vadd.f32 %v1113_v1, %v841_v25 }
 0x450   :  { %v769_v2 = vpop.f32.mrf.mxu1 }
 0x451   :  { %785 = vst [vmem:[%s1541_s3 + $0x38] sm:$0xff] %v775_v38  ;;  %v770_v3 = vadd.f32 %v841_v25, %v769_v2 }
 0x453   :  { %784 = vst [vmem:[%s1541_s3 + $0x30] sm:$0xff] %v770_v3 }

</bundles_post_ra>
